<compile_context>
chip_gen: v7x
topology: tpu7x:2x2x1
jax: 0.10.0
libtpu: 0.0.40
codegen_flags: <defaults>
</compile_context>

<pallas_src>
import jax
import jax.numpy as jnp
from jax.experimental import pallas as pl
from jax.experimental.pallas import tpu as pltpu


M_PAD, K_PAD, N_PAD = 8, 8, 128   # minimal tile-aligned slabs


def linear_kernel(x_ref, w_ref, o_ref):
    # x_ref: (8, 8)    rows 0..M-1 real; column K holds the affine 1s
    # w_ref: (8, 128)  rows 0..K-1 = W^T, row K = bias, rest zeros
    # o_ref: (8, 128)  lane-dense output tile -> unmasked vector stores
    o_ref[...] = jnp.dot(
        x_ref[...], w_ref[...], preferred_element_type=jnp.float32
    )


def make_padded_weight(weight, bias):
    """Build the (K_PAD, N_PAD) affine weight slab once, at init time."""
    N, K = weight.shape
    w_pad = jnp.zeros((K_PAD, N_PAD), jnp.float32)
    w_pad = w_pad.at[:K, :N].set(weight.T.astype(jnp.float32))   # (K, N) layout
    w_pad = w_pad.at[K, :N].set(bias.astype(jnp.float32))        # bias row
    return w_pad


def linear_pallas(x_flat, w_pad, n_out):
    M, K = x_flat.shape
    # Affine augmentation (ones column) + single fused pad to the (8, 8) slab.
    x_aug = jnp.concatenate(
        [x_flat.astype(jnp.float32), jnp.ones((M, 1), jnp.float32)], axis=1
    )
    x_pad = jnp.pad(x_aug, ((0, M_PAD - M), (0, K_PAD - (K + 1))))

    out_pad = pl.pallas_call(
        linear_kernel,
        out_shape=jax.ShapeDtypeStruct((M_PAD, N_PAD), jnp.float32),
        in_specs=[
            pl.BlockSpec(memory_space=pltpu.MemorySpace.VMEM),
            pl.BlockSpec(memory_space=pltpu.MemorySpace.VMEM),
        ],
        out_specs=pl.BlockSpec(memory_space=pltpu.MemorySpace.VMEM),
    )(x_pad, w_pad)
    return out_pad[:M, :n_out]


def make_model_forward(weight, bias):
    """Mirror of the PyTorch module: returns a jitted forward closing over the
    precomputed padded weight slab."""
    w_pad = make_padded_weight(weight, bias)
    n_out = weight.shape[0]

    @jax.jit
    def forward(x):
        B, S, F = x.shape
        out = linear_pallas(x.reshape(B * S, F), w_pad, n_out)
        # TODO(synk): y / z / res1 / res2 / res3 of the reference forward are
        # dead code (never reach the return value) and are intentionally omitted.
        return out.reshape(B, S, n_out)

    return forward


if __name__ == "__main__":
    key = jax.random.PRNGKey(0)
    k_in, k_w, k_b = jax.random.split(key, 3)

    in_features, out_features = 2, 2
    bound = 1.0 / jnp.sqrt(in_features)

    # Deterministic PyTorch-style uniform(-1/sqrt(in), 1/sqrt(in)) init.
    weight = jax.random.uniform(
        k_w, (out_features, in_features), jnp.float32, minval=-bound, maxval=bound
    )
    bias = jax.random.uniform(
        k_b, (out_features,), jnp.float32, minval=-bound, maxval=bound
    )

    # Input consistent with the module: (1, 2, 2)
    x = jax.random.normal(k_in, (1, 2, 2), jnp.float32)

    forward = make_model_forward(weight, bias)
    out = forward(x)
    jax.block_until_ready(out)

    # Sanity check against plain-JAX reference of the linear layer.
    ref = x @ weight.T + bias
    assert out.shape == ref.shape, "shape mismatch vs reference"
    assert jnp.allclose(out, ref, atol=1e-5, rtol=1e-5), "mismatch vs reference"

    print("KERNEL_OK")
</pallas_src>

<mosaic_0001>
module attributes {stable_mosaic.version = 11 : i64} {
  func.func @linear_kernel(%arg0: memref<8x8xf32, #tpu.memory_space<vmem>>, %arg1: memref<8x128xf32, #tpu.memory_space<vmem>>, %arg2: memref<8x128xf32, #tpu.memory_space<vmem>>) attributes {dimension_semantics = [], scalar_prefetch = 0 : i64, scratch_operands = 0 : i64, tpu.core_type = #tpu.core_type<tc>} {
    %c0 = arith.constant 0 : index
    %c0_0 = arith.constant 0 : index
    %0 = vector.load %arg0[%c0, %c0_0] : memref<8x8xf32, #tpu.memory_space<vmem>>, vector<8x8xf32>
    %c0_1 = arith.constant 0 : index
    %c0_2 = arith.constant 0 : index
    %1 = vector.load %arg1[%c0_1, %c0_2] : memref<8x128xf32, #tpu.memory_space<vmem>>, vector<8x128xf32>
    %cst = arith.constant dense<0.000000e+00> : vector<8x128xf32>
    %2 = tpu.matmul %0, %1, %cst {dimension_numbers = #tpu.dot_dimension_numbers<[1], [0], [0], [1], [0, 0, 1, 1], [], []>} : vector<8x8xf32>, vector<8x128xf32>, vector<8x128xf32> -> vector<8x128xf32>
    %c0_3 = arith.constant 0 : index
    %c0_4 = arith.constant 0 : index
    %3 = vector.load %arg2[%c0_3, %c0_4] : memref<8x128xf32, #tpu.memory_space<vmem>>, vector<8x128xf32>
    tpu.vector_store %arg2[%c0_3, %c0_4], %2 {strides = array<i32>} : memref<8x128xf32, #tpu.memory_space<vmem>>, vector<8x128xf32>,
    return
  }
}

</mosaic_0001>

<bundles_post_ra>
// kernel: forward.1
= control target key start
LH: loop header
LB: loop body
LE: loop exit
PB: predicated region body
PF: predicated region fallthrough
CT: control target
= control target key end

     0   :  { %vm13_vm0 = vcmask 64512   ;;  %v102_v0 = vmov 0.0   ;;  %vm103_vm1 = vmmov 0   ;;  %s128_s1 = inlined_call_operand.vmem [shape: f32[8,128], index: 1, kind: input, shape index: {}]   ;;  %s129_s0 = inlined_call_operand.vmem [shape: f32[8,8], index: 0, kind: input, shape index: {}]   ;;  %s130_s2 = inlined_call_operand.vmem [shape: f32[8,128], index: 2, kind: output, shape index: {}]  }
   0x1   :  { %95 = vmatprep.subr.mxu0 %v102_v0  ;;  %v12_v1 = vld [vmem:[%s128_s1] sm:$0xff]  ;;  %97 = vmatprep.mubr.msk.f32.mxu0 %vm103_vm1, %v102_v0 }
   0x2   :  { %v11_v2 = vld [vmem:[%s129_s0] sm:$0xff]  ;;  %96 = vmatpush3.msra.mxu0 %v12_v1 }
   0x3   :  { %98 = vmatmul.mubr.msk.f32.vlgmr.msra.gmra.mrb[0].mxu0 %vm13_vm0, %v11_v2 }
  0xd6   :  { %v83_v3 = vpop.f32.mrb[0].mxu0 }
  0xd7   :  { %87 = vst [vmem:[%s130_s2] sm:$0xff] %v83_v3  ;;  %v99_v4 = vpop.f32.mrb[1].mxu0 }

</bundles_post_ra>
